<compile_context>
chip_gen: v6e
topology: v6e:2x2x1
jax: 0.10.0
libtpu: 0.0.40
codegen_flags: <defaults>
</compile_context>

<pallas_src>
import functools

import jax
import jax.numpy as jnp
from jax.experimental import pallas as pl
from jax.experimental.pallas import tpu as pltpu


def _rbf_kernel(x_ref, p_ref, xn_ref, pn_ref, o_ref, *, two_beta, nonneg_beta, bf16_exp):
    # x_ref : (tm, dim)  input tile (native dtype -> MXU)
    # p_ref : (tn, dim)  RBF-center tile (native dtype -> MXU)
    # xn_ref: (tm, 1)    precomputed  -beta * ||x||^2      (f32, hoisted)
    # pn_ref: (1, tn)    precomputed  -beta * ||points||^2 (f32, hoisted)
    # o_ref : (tm, tn)   exp(-beta * clamp(d2, 0))
    #
    # x @ points.T on the MXU: contract axis 1 of both operands directly
    # (transposed-RHS form), no XLU transpose of the (tn, dim) tile.
    xp = jax.lax.dot_general(
        x_ref[...], p_ref[...],
        dimension_numbers=(((1,), (1,)), ((), ())),
        preferred_element_type=jnp.float32,
    )                                                       # (tm, tn) f32

    # t = -beta * d2 : all -beta scaling already folded into the hoisted norms.
    t = xn_ref[...] + pn_ref[...] + two_beta * xp
    # -beta * clamp(d2, 0) == min(t, 0) for beta >= 0 (max(t, 0) for beta < 0).
    t = jnp.minimum(t, 0.0) if nonneg_beta else jnp.maximum(t, 0.0)
    if bf16_exp:
        # bf16 EUP exp (v6e/v7x): result is rounded to bf16 anyway.
        o_ref[...] = jnp.exp(t.astype(jnp.bfloat16)).astype(o_ref.dtype)
    else:
        o_ref[...] = jnp.exp(t).astype(o_ref.dtype)


def _round_up(x, m):
    return ((x + m - 1) // m) * m


def rbf_forward(x, points, beta=1.0, *, tm=None, tn=None):
    """Pallas RBF forward. x: (B, dim), points: (N, dim) -> exp(-beta*d2): (B, N)."""
    B, dim = x.shape
    N, dim_p = points.shape
    assert dim == dim_p
    out_dtype = x.dtype

    # TODO(synk): only a static Python-scalar beta (the module default) is
    # supported; a traced / learnable beta or the per-point (1, num_points)
    # tensor beta of the PyTorch module would need an SMEM scalar/vector input.
    beta_f = float(beta)

    m_align = 16 if out_dtype == jnp.bfloat16 else 8

    # Generation-aware VMEM budget (v5e/v6e: 128 MiB, v7x: 64 MiB).
    try:
        vmem_cap = int(pltpu.get_tpu_info().vmem_capacity_bytes)
    except Exception:
        vmem_cap = 64 * 1024 * 1024
    budget = int(0.45 * vmem_cap)          # target for double-buffered tiles

    def footprint(tm_, tn_):
        # double-buffered VMEM bytes of all input/output tiles
        return 2 * (tm_ * dim * x.dtype.itemsize
                    + tn_ * dim * points.dtype.itemsize
                    + tm_ * 4 + tn_ * 4
                    + tm_ * tn_ * out_dtype.itemsize)

    # Large, lane-dense tiles, capped by the (aligned) problem size and budget.
    if tm is None:
        tm = min(256, _round_up(B, m_align))
    tm = max(m_align, (tm // m_align) * m_align)
    if tn is None:
        tn_cap = 2048 if vmem_cap >= (96 << 20) else 512
        tn = min(tn_cap, _round_up(N, 128))
    tn = max(128, (tn // 128) * 128)
    while footprint(tm, tn) > budget and tn > 128:
        tn = max(128, ((tn // 2) // 128) * 128)
    while footprint(tm, tn) > budget and tm > m_align:
        tm = max(m_align, tm // 2)
    # TODO(synk): K-tiled fallback (third "arbitrary" grid axis + f32 accumulator
    # scratch) if dim ever gets large enough that full-dim tiles exceed the budget.

    # Hoisted, pre-scaled squared norms (tiny (B,1)/(1,N) f32 side inputs).
    x32 = x.astype(jnp.float32)
    p32 = points.astype(jnp.float32)
    xn = (-beta_f) * jnp.sum(x32 * x32, axis=1, keepdims=True)      # (B, 1) f32
    pn = (-beta_f) * jnp.sum(p32 * p32, axis=1)[None, :]            # (1, N) f32

    # No wrapper pad / output slice: cdiv grid + Pallas edge blocks.  Garbage in
    # padded edge reads only affects output rows/cols whose writes are masked.
    grid = (pl.cdiv(B, tm), pl.cdiv(N, tn))

    vmem_limit = int(min(max(2 * footprint(tm, tn), 32 * 1024 * 1024),
                         int(0.75 * vmem_cap)))

    cost = pl.CostEstimate(
        flops=2 * B * N * dim,
        transcendentals=B * N,
        bytes_accessed=(B * dim * x.dtype.itemsize
                        + N * dim * points.dtype.itemsize
                        + (B + N) * 4
                        + B * N * out_dtype.itemsize),
    )

    kernel = functools.partial(
        _rbf_kernel,
        two_beta=2.0 * beta_f,
        nonneg_beta=(beta_f >= 0.0),
        bf16_exp=(out_dtype == jnp.bfloat16),
    )

    return pl.pallas_call(
        kernel,
        out_shape=jax.ShapeDtypeStruct((B, N), out_dtype),
        grid_spec=pltpu.PrefetchScalarGridSpec(
            num_scalar_prefetch=0,
            grid=grid,
            in_specs=[
                pl.BlockSpec((tm, dim), lambda i, j: (i, 0)),   # x rows
                pl.BlockSpec((tn, dim), lambda i, j: (j, 0)),   # center rows
                pl.BlockSpec((tm, 1), lambda i, j: (i, 0)),     # -beta*||x||^2
                pl.BlockSpec((1, tn), lambda i, j: (0, j)),     # -beta*||points||^2
            ],
            out_specs=pl.BlockSpec((tm, tn), lambda i, j: (i, j)),
        ),
        compiler_params=pltpu.CompilerParams(
            dimension_semantics=("parallel", "parallel"),
            vmem_limit_bytes=vmem_limit,
        ),
        cost_estimate=cost,
    )(x, points, xn, pn)


def rbf_reference(x, points, beta=1.0):
    x32 = x.astype(jnp.float32)
    p32 = points.astype(jnp.float32)
    x_norm = jnp.sum(x32 * x32, axis=1, keepdims=True)
    p_norm = jnp.sum(p32 * p32, axis=1)[None, :]
    d2 = jnp.maximum(x_norm + p_norm - 2.0 * (x32 @ p32.T), 0.0)
    return jnp.exp(-beta * d2).astype(x.dtype)


if __name__ == "__main__":
    key = jax.random.PRNGKey(0)
    k1, k2, k3, k4, k5, k6 = jax.random.split(key, 6)

    # Case 1: tile-aligned shapes (RBF(dim=32, num_points=128), batch=16).
    x = jax.random.normal(k1, (16, 32), dtype=jnp.float32)
    pts = jax.random.normal(k2, (128, 32), dtype=jnp.float32)       # ~ torch.randn
    out = jax.block_until_ready(rbf_forward(x, pts, beta=1.0))
    ref = rbf_reference(x, pts, beta=1.0)
    assert out.shape == (16, 128)
    assert jnp.allclose(out, ref, atol=1e-5, rtol=1e-5), "mismatch vs reference (case 1)"

    # Case 2: non-aligned shapes exercise Pallas edge blocks (no pad / no slice).
    x2 = jax.random.normal(k3, (10, 24), dtype=jnp.float32)
    pts2 = jax.random.normal(k4, (200, 24), dtype=jnp.float32)
    out2 = jax.block_until_ready(rbf_forward(x2, pts2, beta=0.5))
    ref2 = rbf_reference(x2, pts2, beta=0.5)
    assert out2.shape == (10, 200)
    assert jnp.allclose(out2, ref2, atol=1e-5, rtol=1e-5), "mismatch vs reference (case 2)"

    # Case 3: bf16 inputs/outputs (bf16 MXU matmul + bf16 EUP exp path).
    x3 = jax.random.normal(k5, (32, 32), dtype=jnp.bfloat16)
    pts3 = jax.random.normal(k6, (256, 32), dtype=jnp.bfloat16)
    out3 = jax.block_until_ready(rbf_forward(x3, pts3, beta=1.5))
    ref3 = rbf_reference(x3, pts3, beta=1.5)
    assert out3.shape == (32, 256)
    assert jnp.allclose(out3.astype(jnp.float32), ref3.astype(jnp.float32),
                        atol=3e-2, rtol=3e-2), "mismatch vs reference (case 3)"

    print("KERNEL_OK")
</pallas_src>

<mosaic_0001>
module attributes {stable_mosaic.version = 11 : i64} {
  func.func @_rbf_kernel(%arg0: i32, %arg1: i32, %arg2: memref<16x32xf32, #tpu.memory_space<vmem>>, %arg3: memref<128x32xf32, #tpu.memory_space<vmem>>, %arg4: memref<16x1xf32, #tpu.memory_space<vmem>>, %arg5: memref<1x128xf32, #tpu.memory_space<vmem>>, %arg6: memref<16x128xf32, #tpu.memory_space<vmem>>) attributes {dimension_semantics = [#tpu.dimension_semantics<parallel>, #tpu.dimension_semantics<parallel>], iteration_bounds = array<i64: 1, 1>, scalar_prefetch = 0 : i64, scratch_operands = 0 : i64, tpu.core_type = #tpu.core_type<tc>, window_params = [{transform_indices = @transform_0, window_bounds = array<i64: 16, 32>}, {transform_indices = @transform_1, window_bounds = array<i64: 128, 32>}, {transform_indices = @transform_2, window_bounds = array<i64: 16, 1>}, {transform_indices = @transform_3, window_bounds = array<i64: 1, 128>}, {transform_indices = @transform_4, window_bounds = array<i64: 16, 128>}]} {
    %c0 = arith.constant 0 : index
    %c0_0 = arith.constant 0 : index
    %0 = vector.load %arg2[%c0, %c0_0] : memref<16x32xf32, #tpu.memory_space<vmem>>, vector<16x32xf32>
    %c0_1 = arith.constant 0 : index
    %c0_2 = arith.constant 0 : index
    %1 = vector.load %arg3[%c0_1, %c0_2] : memref<128x32xf32, #tpu.memory_space<vmem>>, vector<128x32xf32>
    %cst = arith.constant dense<0.000000e+00> : vector<16x128xf32>
    %2 = tpu.matmul %0, %1, %cst {dimension_numbers = #tpu.dot_dimension_numbers<[1], [1], [0], [0], [0, 0, 1, 0], [], []>} : vector<16x32xf32>, vector<128x32xf32>, vector<16x128xf32> -> vector<16x128xf32>
    %c0_3 = arith.constant 0 : index
    %c0_4 = arith.constant 0 : index
    %3 = vector.load %arg4[%c0_3, %c0_4] : memref<16x1xf32, #tpu.memory_space<vmem>>, vector<16x1xf32>
    %c0_5 = arith.constant 0 : index
    %c0_6 = arith.constant 0 : index
    %4 = vector.load %arg5[%c0_5, %c0_6] : memref<1x128xf32, #tpu.memory_space<vmem>>, vector<1x128xf32>
    %5 = vector.broadcast %3 : vector<16x1xf32> to vector<16x128xf32>
    %6 = vector.broadcast %4 : vector<1x128xf32> to vector<16x128xf32>
    %7 = arith.addf %5, %6 : vector<16x128xf32>
    %cst_7 = arith.constant 2.000000e+00 : f32
    %8 = vector.broadcast %cst_7 : f32 to vector<16x128xf32>
    %9 = arith.mulf %8, %2 : vector<16x128xf32>
    %10 = arith.addf %7, %9 : vector<16x128xf32>
    %cst_8 = arith.constant 0.000000e+00 : f32
    %11 = vector.broadcast %cst_8 : f32 to vector<16x128xf32>
    %12 = arith.minimumf %10, %11 : vector<16x128xf32>
    %13 = math.exp %12 : vector<16x128xf32>
    %c0_9 = arith.constant 0 : index
    %c0_10 = arith.constant 0 : index
    %14 = vector.load %arg6[%c0_9, %c0_10] : memref<16x128xf32, #tpu.memory_space<vmem>>, vector<16x128xf32>
    tpu.vector_store %arg6[%c0_9, %c0_10], %13 {strides = array<i32>} : memref<16x128xf32, #tpu.memory_space<vmem>>, vector<16x128xf32>,
    return
  }
  func.func @transform_0(%arg0: i32, %arg1: i32) -> (i32, i32) {
    %c0_i32 = arith.constant 0 : i32
    %c0_i32_0 = arith.constant 0 : i32
    return %arg0, %c0_i32 : i32, i32
  }
  func.func @transform_1(%arg0: i32, %arg1: i32) -> (i32, i32) {
    %c0_i32 = arith.constant 0 : i32
    %c0_i32_0 = arith.constant 0 : i32
    return %arg1, %c0_i32 : i32, i32
  }
  func.func @transform_2(%arg0: i32, %arg1: i32) -> (i32, i32) {
    %c0_i32 = arith.constant 0 : i32
    %c0_i32_0 = arith.constant 0 : i32
    return %arg0, %c0_i32 : i32, i32
  }
  func.func @transform_3(%arg0: i32, %arg1: i32) -> (i32, i32) {
    %c0_i32 = arith.constant 0 : i32
    %c0_i32_0 = arith.constant 0 : i32
    return %c0_i32, %arg1 : i32, i32
  }
  func.func @transform_4(%arg0: i32, %arg1: i32) -> (i32, i32) {
    %c0_i32 = arith.constant 0 : i32
    return %arg0, %arg1 : i32, i32
  }
}

</mosaic_0001>

<bundles_post_ra>
// kernel: tpu_custom_call.1
= control target key start
LH: loop header
LB: loop body
LE: loop exit
PB: predicated region body
PF: predicated region fallthrough
CT: control target
= control target key end

     0   :  { %vm36_vm0 = vcmask 261120   ;;  %v318_v2 = vmov 0   ;;  %s447_s0 = inlined_call_operand.vmem [shape: f32[16,32], index: 0, kind: input, shape index: {}]   ;;  %s448_s1 = inlined_call_operand.vmem [shape: f32[128,32], index: 1, kind: input, shape index: {}]   ;;  %s449_s2 = inlined_call_operand.vmem [shape: f32[16,1], index: 2, kind: input, shape index: {}]   ;;  %s450_s3 = inlined_call_operand.vmem [shape: f32[1,128], index: 3, kind: input, shape index: {}]   ;;  %s451_s4 = inlined_call_operand.hbm [shape: f32[16,128], index: 4, kind: output, shape index: {}]  }
   0x1   :  { %v35_v0 = vld [vmem:[%s448_s1 + $0x78] sm:$0xff]  ;;  %v34_v1 = vld [vmem:[%s448_s1 + $0x70] sm:$0xff]  ;;  %291 = vset.pattern.permute.xlu0 %v318_v2  ;;  %v33_v3 = vld [vmem:[%s448_s1 + $0x68] sm:$0xff] }
   0x2   :  { %252 = vmatprep.subr.msk.mxu0 %vm36_vm0, %v35_v0  ;;  %v18_v4 = vld [vmem:[%s447_s0] sm:$0xff] }
   0x3   :  { %253 = vmatpush3.xpose.msk.msra.mxu0 %vm36_vm0, %v35_v0  ;;  %284 = vmatprep.mubr.msk.f32.mxu0 %vm36_vm0, %v18_v4  ;;  %v166_v5 = vld [vmem:[%s449_s2] sm:$0xff] }
   0x4   :  { %254 = vmatprep.subr.msk.mxu0 %vm36_vm0, %v34_v1  ;;  %171 = vperm.xlu0 %291, %v166_v5  }
   0x7   :  { %255 = vmatpush3.xpose.msk.msra.mxu0 %vm36_vm0, %v34_v1 }
   0x8   :  { %256 = vmatprep.subr.msk.mxu0 %vm36_vm0, %v33_v3 }
   0x9   :  { %9 = vsyncpa [#allocation3], 0  ;;  %v32_v6 = vld [vmem:[%s448_s1 + $0x60] sm:$0xff]  ;;  %v167_v7 = vld [vmem:[%s449_s2 + $0x8] sm:$0xff] }
   0xa   :  { %176 = vperm.xlu0 %291, %v167_v7   ;;  %v31_v8 = vld [vmem:[%s448_s1 + $0x58] sm:$0xff]  ;;  %v30_v9 = vld [vmem:[%s448_s1 + $0x50] sm:$0xff]  ;;  %v29_v10 = vld [vmem:[%s448_s1 + $0x48] sm:$0xff] }
   0xb   :  { %257 = vmatpush3.xpose.msk.msra.mxu0 %vm36_vm0, %v33_v3  ;;  %v28_v11 = vld [vmem:[%s448_s1 + $0x40] sm:$0xff]  ;;  %v27_v12 = vld [vmem:[%s448_s1 + $0x38] sm:$0xff]  ;;  %v26_v13 = vld [vmem:[%s448_s1 + $0x30] sm:$0xff] }
   0xc   :  { %258 = vmatprep.subr.msk.mxu0 %vm36_vm0, %v32_v6  ;;  %v25_v14 = vld [vmem:[%s448_s1 + $0x28] sm:$0xff]  ;;  %v24_v15 = vld [vmem:[%s448_s1 + $0x20] sm:$0xff]  ;;  %v23_v16 = vld [vmem:[%s448_s1 + $0x18] sm:$0xff] }
   0xd   :  { %v22_v17 = vld [vmem:[%s448_s1 + $0x10] sm:$0xff]  ;;  %v21_v18 = vld [vmem:[%s448_s1 + $0x8] sm:$0xff]  ;;  %v20_v19 = vld [vmem:[%s448_s1] sm:$0xff] }
   0xe   :  { %v19_v20 = vld [vmem:[%s447_s0 + $0x8] sm:$0xff]  ;;  %v233_v22 = vld [vmem:[%s450_s3] ss:$0 sm:$0xff]  ;;  %s319_s0 = smov [#allocation2]  }
   0xf   :  { %259 = vmatpush3.xpose.msk.msra.mxu0 %vm36_vm0, %v32_v6  ;;  %s204_s1 = sshll.u32 %s319_s0, 4  ;;  %s205_s1 = int_to_ptr.vmem [resolvable:$true] %s204_s1 }
  0x10   :  { %260 = vmatprep.subr.msk.mxu0 %vm36_vm0, %v31_v8  ;;  %s296_s3 = scalar_lea.vmem %s205_s1, 256  ;;  %p301_p1 = scmp.lt.s32.totalorder %s205_s1, %s205_s1 }
  0x11   :  { %p297_p0 = scmp.ne.s32.totalorder %s205_s1, %s296_s3  ;;  %p302_p2 = scmp.lt.s32.totalorder %s296_s3, %s296_s3 }
  0x13   :  { %261 = vmatpush3.xpose.msk.msra.mxu0 %vm36_vm0, %v31_v8  ;;  %p303_p3 = por %p302_p2, %p301_p1 }
  0x14   :  { %262 = vmatprep.subr.msk.mxu0 %vm36_vm0, %v30_v9 }
  0x15   :  { %p304_p4 = pnand %p303_p3, %p297_p0 }
  0x17   :  { %263 = vmatpush3.xpose.msk.msra.mxu0 %vm36_vm0, %v30_v9 }
  0x18   :  { %264 = vmatprep.subr.msk.mxu0 %vm36_vm0, %v29_v10 }
  0x1b   :  { %265 = vmatpush3.xpose.msk.msra.mxu0 %vm36_vm0, %v29_v10 }
  0x1c   :  { %266 = vmatprep.subr.msk.mxu0 %vm36_vm0, %v28_v11 }
  0x1f   :  { %267 = vmatpush3.xpose.msk.msra.mxu0 %vm36_vm0, %v28_v11 }
  0x20   :  { %268 = vmatprep.subr.msk.mxu0 %vm36_vm0, %v27_v12 }
  0x23   :  { %269 = vmatpush3.xpose.msk.msra.mxu0 %vm36_vm0, %v27_v12 }
  0x24   :  { %270 = vmatprep.subr.msk.mxu0 %vm36_vm0, %v26_v13 }
  0x27   :  { %271 = vmatpush3.xpose.msk.msra.mxu0 %vm36_vm0, %v26_v13 }
  0x28   :  { %272 = vmatprep.subr.msk.mxu0 %vm36_vm0, %v25_v14 }
  0x2b   :  { %273 = vmatpush3.xpose.msk.msra.mxu0 %vm36_vm0, %v25_v14 }
  0x2c   :  { %274 = vmatprep.subr.msk.mxu0 %vm36_vm0, %v24_v15 }
  0x2f   :  { %275 = vmatpush3.xpose.msk.msra.mxu0 %vm36_vm0, %v24_v15 }
  0x30   :  { %276 = vmatprep.subr.msk.mxu0 %vm36_vm0, %v23_v16 }
  0x33   :  { %277 = vmatpush3.xpose.msk.msra.mxu0 %vm36_vm0, %v23_v16 }
  0x34   :  { %278 = vmatprep.subr.msk.mxu0 %vm36_vm0, %v22_v17 }
  0x37   :  { %279 = vmatpush3.xpose.msk.msra.mxu0 %vm36_vm0, %v22_v17 }
  0x38   :  { %280 = vmatprep.subr.msk.mxu0 %vm36_vm0, %v21_v18 }
  0x3b   :  { %281 = vmatpush3.xpose.msk.msra.mxu0 %vm36_vm0, %v21_v18 }
  0x3c   :  { %282 = vmatprep.subr.msk.mxu0 %vm36_vm0, %v20_v19 }
  0x3f   :  { %283 = vmatpush3.xpose.msk.msra.mxu0 %vm36_vm0, %v20_v19 }
  0x42   :  { %285 = vmatmul.mubr.msk.f32.vlgmr.msra.gmra.mxu0 %vm36_vm0, %v19_v20 }
  0x7f   :  { %v172_v21 = vpop.permute.xlu0 %171 }
  0x80   :  { %v185_v28 = vadd.f32 %v233_v22, %v172_v21 }
  0x85   :  { %v177_v23 = vpop.permute.xlu0 %176 }
  0x86   :  { %v186_v25 = vadd.f32 %v233_v22, %v177_v23 }
 0x102   :  { %v286_v24 = vpop.f32.mrf.mxu0 }
 0x103   :  { %v188_v26 = vmul.f32 2.0, %v286_v24 }
 0x104   :  { %v157_v27 = vpop.f32.mrf.mxu0 }
 0x105   :  { %v190_v29 = vadd.f32 %v188_v26, %v186_v25  ;;  %v187_v30 = vmul.f32 2.0, %v157_v27 }
 0x107   :  { %v192_v31 = vmin.f32 %v190_v29, 0.0  ;;  %v189_v32 = vadd.f32 %v187_v30, %v185_v28 }
 0x109   :  { %v195_v33 = vmul.f32 1.442695, %v192_v31  ;;  %v191_v34 = vmin.f32 %v189_v32, 0.0 }
 0x10b   :  { %292 = vpow2.f32 %v195_v33  ;;  %v193_v35 = vmul.f32 1.442695, %v191_v34 }
 0x10d   :  { %294 = vpow2.f32 %v193_v35 }
 0x118   :  { %v293_v36 = vpop.eup %292 }
 0x119   :  { %198 = vst [vmem:[#allocation2 + $0x8] sm:$0xff] %v293_v36 }
 0x11a   :  { %v295_v37 = vpop.eup %294 }
 0x11b   :  { %197 = vst [vmem:[#allocation2] sm:$0xff] %v295_v37 }
 0x11c   :  { %307 = shalt.err (!%p304_p4)
}
 0x11d   :  { %s320_s30 = smov 128   ;;  %s321_s5 = smov 8  }
 0x11e   :  { %210 = dma.vmem_to_hbm [thread:$0]  %s205_s1, 256, %s451_s4, [#allocation3], %s320_s30, %s320_s30, %s321_s5  }
 0x11f   :  { %316 = dma.done.wait [#allocation3], 256  }
 0x120   :  { %317 = vsyncadd [#allocation3], 4294967040 }
 0x121   :  { %214 = vsyncpa [#allocation3], 1 }

</bundles_post_ra>
